<compile_context>
chip_gen: v6e
topology: v6e:2x2x1
jax: 0.10.0
libtpu: 0.0.40
codegen_flags: <defaults>
</compile_context>

<pallas_src>
import functools

import jax
import jax.numpy as jnp
from jax import lax
from jax.experimental import pallas as pl
from jax.experimental.pallas import tpu as pltpu


_NUM_CORE_SPLITS = 2  # leading "parallel" grid axis (v7x has 2 TCs/chip)


def _round_up(x, m):
    return ((x + m - 1) // m) * m


def _pick_tb(n, c, itemsize, vmem_budget):
    """Largest row tile whose double-buffered pred block fits the budget."""
    lane_bytes = _round_up(max(c, 1), 128) * itemsize
    rows = max(vmem_budget // (2 * lane_bytes), 16)
    rows = min(rows, 1024)
    rows = (rows // 16) * 16                     # multiple of 16: f32 & bf16 tiling
    rows = min(rows, _round_up(max(n, 1), 16))   # don't exceed the batch
    return max(rows, 16)


def _label_smoothing_kernel(pred_ref, tgt_ref, out_ref, acc_ref, *,
                            confidence, smooth_val, sum_td, n_valid, tb, nb):
    i = pl.program_id(1)               # row-block axis ("arbitrary", accumulated)

    @pl.when(i == 0)
    def _():
        acc_ref[...] = jnp.zeros_like(acc_ref)

    # ---- folded smoothed-CE over the class (lane) axis ----
    # row_loss = sum_td*(m + lse) - smooth_val*sum_c(x)
    #            - (confidence - smooth_val)*x[target]
    x = pred_ref[...].astype(jnp.float32)                       # (tb, C)
    m = jnp.max(x, axis=-1, keepdims=True)                      # (tb, 1)
    lse = jnp.log(jnp.sum(jnp.exp(x - m), axis=-1, keepdims=True))
    sx = jnp.sum(x, axis=-1, keepdims=True)                     # (tb, 1)

    # x[target] via iota == target mask (VPU select + lane reduce).
    tgt = tgt_ref[...]                                          # (tb, 1) int32
    col = lax.broadcasted_iota(jnp.int32, x.shape, 1)           # (tb, C)
    xt = jnp.sum(jnp.where(col == tgt, x, 0.0), axis=-1, keepdims=True)

    row_loss = (jnp.float32(sum_td) * (m + lse)
                - jnp.float32(smooth_val) * sx
                - jnp.float32(confidence - smooth_val) * xt)    # (tb, 1)

    # Mask ragged-boundary / duplicated-overhang rows using the *logical*
    # (unclamped) global row index.  `where` is a select, so garbage / NaN
    # from Pallas' boundary padding never propagates into the sum.
    row_start = (pl.program_id(0) * nb + i) * tb
    gidx = row_start + lax.broadcasted_iota(jnp.int32, (tb, 1), 0)
    row_loss = jnp.where(gidx < n_valid, row_loss, 0.0)

    # VMEM vector accumulation (no per-step scalar reduce / SMEM write).
    acc_ref[...] += row_loss

    @pl.when(i == pl.num_programs(1) - 1)
    def _():
        out_ref[0, 0] = jnp.sum(acc_ref[...])


def label_smoothing_loss(pred, target, *, classes, smoothing=0.0, tb=None):
    """pred: (N, C) float (f32 or bf16), target: (N,) int. Returns scalar f32."""
    n, c = pred.shape
    assert c == classes

    confidence = 1.0 - smoothing
    smooth_val = smoothing / (classes - 1)
    sum_td = confidence + (classes - 1) * smooth_val   # == 1.0 analytically

    itemsize = jnp.dtype(pred.dtype).itemsize

    # Per-generation VMEM capacity (64 MiB on v7x, 128 MiB on v5e/v6e).
    try:
        vmem_cap = int(pltpu.get_tpu_info().vmem_capacity_bytes)
    except Exception:
        vmem_cap = 64 << 20  # conservative fallback (v7x per-TC VMEM)

    if tb is None:
        tb = _pick_tb(n, c, itemsize, vmem_budget=int(vmem_cap * 0.4))

    nblocks = pl.cdiv(n, tb)                    # total row blocks (last may be ragged)
    splits = min(_NUM_CORE_SPLITS, nblocks)     # megacore split (no-op on 1-TC chips)
    nb = pl.cdiv(nblocks, splits)               # row blocks per core
    clamp = (splits * nb != nblocks)            # last core has overhang blocks

    def block_idx(p, i):
        b = p * nb + i
        if clamp:
            # Overhang blocks re-read the last valid block; their rows are
            # masked in-kernel via the logical row index.
            b = jnp.minimum(b, nblocks - 1)
        return b

    tgt2d = target.astype(jnp.int32).reshape(n, 1)

    # Raise the scoped VMEM limit to cover the chosen tiles (with headroom).
    pred_tile = tb * _round_up(c, 128) * itemsize
    vmem_needed = 2 * pred_tile + 2 * tb * 128 * 4 + tb * 128 * 4
    vmem_limit = max(32 << 20, min(int(vmem_needed * 1.5) + (4 << 20),
                                   int(vmem_cap * 0.9)))

    kernel = functools.partial(_label_smoothing_kernel,
                               confidence=confidence,
                               smooth_val=smooth_val,
                               sum_td=sum_td,
                               n_valid=n,
                               tb=tb,
                               nb=nb)

    partials = pl.pallas_call(
        kernel,
        out_shape=jax.ShapeDtypeStruct((splits, 1), jnp.float32),
        grid_spec=pltpu.PrefetchScalarGridSpec(
            num_scalar_prefetch=0,
            grid=(splits, nb),
            in_specs=[
                # pred: (tb, C) tile, streamed per step (dtype preserved on the
                # wire; cast to f32 inside the kernel).
                pl.BlockSpec((tb, c), lambda p, i: (block_idx(p, i), 0)),
                # target ids: tiny (tb, 1) tile per step.
                pl.BlockSpec((tb, 1), lambda p, i: (block_idx(p, i), 0)),
            ],
            out_specs=pl.BlockSpec((1, 1), lambda p, i: (p, 0),
                                   memory_space=pltpu.SMEM),
            scratch_shapes=[pltpu.VMEM((tb, 1), jnp.float32)],
        ),
        compiler_params=pltpu.CompilerParams(
            dimension_semantics=("parallel", "arbitrary"),
            vmem_limit_bytes=vmem_limit,
        ),
    )(pred, tgt2d)

    # Final cross-core reduce + mean in the wrapper.
    return jnp.sum(partials) / jnp.float32(n)


def _reference(pred, target, classes, smoothing):
    logp = jax.nn.log_softmax(pred.astype(jnp.float32), axis=-1)
    confidence = 1.0 - smoothing
    smooth_val = smoothing / (classes - 1)
    true_dist = jnp.full_like(logp, smooth_val)
    true_dist = true_dist.at[jnp.arange(pred.shape[0]), target].set(confidence)
    return jnp.mean(jnp.sum(-true_dist * logp, axis=-1))


if __name__ == "__main__":
    key = jax.random.PRNGKey(0)
    k1, k2, k3, k4 = jax.random.split(key, 4)

    smoothing = 0.1

    # --- primary test: f32, auto tile selection (ragged single block) ---
    N, C = 8, 32
    pred = jax.random.normal(k1, (N, C), dtype=jnp.float32)
    target = jax.random.randint(k2, (N,), 0, C, dtype=jnp.int32)

    loss = label_smoothing_loss(pred, target, classes=C, smoothing=smoothing)
    loss = jax.block_until_ready(loss)
    ref = _reference(pred, target, C, smoothing)
    assert jnp.allclose(loss, ref, rtol=1e-5, atol=1e-5), (loss, ref)

    # --- ragged batch: multi-block accumulation, core-split overhang clamp,
    #     and partial final block masking (small forced tile) ---
    N2, C2 = 37, 32
    pred2 = jax.random.normal(k3, (N2, C2), dtype=jnp.float32)
    target2 = jax.random.randint(k4, (N2,), 0, C2, dtype=jnp.int32)
    loss2 = label_smoothing_loss(pred2, target2, classes=C2,
                                 smoothing=smoothing, tb=8)
    loss2 = jax.block_until_ready(loss2)
    ref2 = _reference(pred2, target2, C2, smoothing)
    assert jnp.allclose(loss2, ref2, rtol=1e-5, atol=1e-5), (loss2, ref2)

    # --- bf16 input path (pred stays bf16 through the DMA, cast in-kernel) ---
    pred_bf16 = pred.astype(jnp.bfloat16)
    loss3 = label_smoothing_loss(pred_bf16, target, classes=C,
                                 smoothing=smoothing)
    loss3 = jax.block_until_ready(loss3)
    ref3 = _reference(pred_bf16, target, C, smoothing)
    assert jnp.allclose(loss3, ref3, rtol=1e-4, atol=1e-4), (loss3, ref3)

    print("KERNEL_OK")
</pallas_src>

<mosaic_0001>
module attributes {stable_mosaic.version = 11 : i64} {
  func.func @_label_smoothing_kernel(%arg0: i32, %arg1: i32, %arg2: memref<16x32xf32, #tpu.memory_space<vmem>>, %arg3: memref<16x1xi32, #tpu.memory_space<vmem>>, %arg4: memref<1x1xf32, #tpu.memory_space<smem>>, %arg5: memref<16x1xf32, #tpu.memory_space<vmem>>) attributes {dimension_semantics = [#tpu.dimension_semantics<parallel>, #tpu.dimension_semantics<arbitrary>], iteration_bounds = array<i64: 1, 1>, scalar_prefetch = 0 : i64, scratch_operands = 1 : i64, tpu.core_type = #tpu.core_type<tc>, window_params = [{transform_indices = @transform_0, window_bounds = array<i64: 16, 32>}, {transform_indices = @transform_1, window_bounds = array<i64: 16, 1>}, {transform_indices = @transform_2, window_bounds = array<i64: 1, 1>}]} {
    %c0_i32 = arith.constant 0 : i32
    %0 = arith.cmpi eq, %arg1, %c0_i32 : i32
    %1 = arith.extui %0 : i1 to i32
    %c0_i32_0 = arith.constant 0 : i32
    %2 = arith.cmpi ne, %1, %c0_i32_0 : i32
    scf.if %2 {
      %cst_18 = arith.constant 0.000000e+00 : f32
      %47 = vector.broadcast %cst_18 : f32 to vector<16x1xf32>
      %c0_19 = arith.constant 0 : index
      %c0_20 = arith.constant 0 : index
      %48 = vector.load %arg5[%c0_19, %c0_20] : memref<16x1xf32, #tpu.memory_space<vmem>>, vector<16x1xf32>
      tpu.vector_store %arg5[%c0_19, %c0_20], %47 {strides = array<i32>} : memref<16x1xf32, #tpu.memory_space<vmem>>, vector<16x1xf32>,
    } else {
    }
    %c0 = arith.constant 0 : index
    %c0_1 = arith.constant 0 : index
    %3 = vector.load %arg2[%c0, %c0_1] : memref<16x32xf32, #tpu.memory_space<vmem>>, vector<16x32xf32>
    %cst = arith.constant dense<0xFF800000> : vector<16xf32>
    %4 = vector.multi_reduction <maximumf>, %3, %cst [1] : vector<16x32xf32> to vector<16xf32>
    %5 = vector.shape_cast %4 : vector<16xf32> to vector<16x1xf32>
    %6 = vector.broadcast %5 : vector<16x1xf32> to vector<16x32xf32>
    %7 = arith.subf %3, %6 : vector<16x32xf32>
    %8 = math.exp %7 : vector<16x32xf32>
    %cst_2 = arith.constant dense<0.000000e+00> : vector<16xf32>
    %9 = vector.multi_reduction <add>, %8, %cst_2 [1] : vector<16x32xf32> to vector<16xf32>
    %10 = vector.shape_cast %9 : vector<16xf32> to vector<16x1xf32>
    %11 = math.log %10 : vector<16x1xf32>
    %cst_3 = arith.constant dense<0.000000e+00> : vector<16xf32>
    %12 = vector.multi_reduction <add>, %3, %cst_3 [1] : vector<16x32xf32> to vector<16xf32>
    %13 = vector.shape_cast %12 : vector<16xf32> to vector<16x1xf32>
    %c0_4 = arith.constant 0 : index
    %c0_5 = arith.constant 0 : index
    %14 = vector.load %arg3[%c0_4, %c0_5] : memref<16x1xi32, #tpu.memory_space<vmem>>, vector<16x1xi32>
    %15 = tpu.iota {dimensions = array<i32: 1>} : vector<16x32xi32>
    %16 = vector.broadcast %14 : vector<16x1xi32> to vector<16x32xi32>
    %17 = arith.cmpi eq, %15, %16 : vector<16x32xi32>
    %cst_6 = arith.constant 0.000000e+00 : f32
    %18 = vector.broadcast %cst_6 : f32 to vector<16x32xf32>
    %19 = arith.select %17, %3, %18 : vector<16x32xi1>, vector<16x32xf32>
    %cst_7 = arith.constant dense<0.000000e+00> : vector<16xf32>
    %20 = vector.multi_reduction <add>, %19, %cst_7 [1] : vector<16x32xf32> to vector<16xf32>
    %21 = vector.shape_cast %20 : vector<16xf32> to vector<16x1xf32>
    %22 = arith.addf %5, %11 : vector<16x1xf32>
    %cst_8 = arith.constant 1.000000e+00 : f32
    %23 = vector.broadcast %cst_8 : f32 to vector<16x1xf32>
    %24 = arith.mulf %23, %22 : vector<16x1xf32>
    %cst_9 = arith.constant 0.0032258064 : f32
    %25 = vector.broadcast %cst_9 : f32 to vector<16x1xf32>
    %26 = arith.mulf %25, %13 : vector<16x1xf32>
    %27 = arith.subf %24, %26 : vector<16x1xf32>
    %cst_10 = arith.constant 0.896774172 : f32
    %28 = vector.broadcast %cst_10 : f32 to vector<16x1xf32>
    %29 = arith.mulf %28, %21 : vector<16x1xf32>
    %30 = arith.subf %27, %29 : vector<16x1xf32>
    %c1_i32 = arith.constant 1 : i32
    %31 = arith.muli %arg0, %c1_i32 : i32
    %32 = arith.addi %31, %arg1 : i32
    %c16_i32 = arith.constant 16 : i32
    %33 = arith.muli %32, %c16_i32 : i32
    %34 = tpu.iota {dimensions = array<i32: 0>} : vector<16x1xi32>
    %35 = vector.broadcast %33 : i32 to vector<16x1xi32>
    %36 = arith.addi %35, %34 : vector<16x1xi32>
    %c8_i32 = arith.constant 8 : i32
    %37 = vector.broadcast %c8_i32 : i32 to vector<16x1xi32>
    %38 = arith.cmpi slt, %36, %37 : vector<16x1xi32>
    %cst_11 = arith.constant 0.000000e+00 : f32
    %39 = vector.broadcast %cst_11 : f32 to vector<16x1xf32>
    %40 = arith.select %38, %30, %39 : vector<16x1xi1>, vector<16x1xf32>
    %c0_12 = arith.constant 0 : index
    %c0_13 = arith.constant 0 : index
    %41 = vector.load %arg5[%c0_12, %c0_13] : memref<16x1xf32, #tpu.memory_space<vmem>>, vector<16x1xf32>
    %42 = arith.addf %41, %40 : vector<16x1xf32>
    %c0_14 = arith.constant 0 : index
    %c0_15 = arith.constant 0 : index
    %43 = vector.load %arg5[%c0_14, %c0_15] : memref<16x1xf32, #tpu.memory_space<vmem>>, vector<16x1xf32>
    tpu.vector_store %arg5[%c0_14, %c0_15], %42 {strides = array<i32>} : memref<16x1xf32, #tpu.memory_space<vmem>>, vector<16x1xf32>,
    %c0_i32_16 = arith.constant 0 : i32
    %44 = arith.cmpi eq, %arg1, %c0_i32_16 : i32
    %45 = arith.extui %44 : i1 to i32
    %c0_i32_17 = arith.constant 0 : i32
    %46 = arith.cmpi ne, %45, %c0_i32_17 : i32
    scf.if %46 {
      %c0_18 = arith.constant 0 : index
      %c0_19 = arith.constant 0 : index
      %47 = vector.load %arg5[%c0_18, %c0_19] : memref<16x1xf32, #tpu.memory_space<vmem>>, vector<16x1xf32>
      %48 = vector.shape_cast %47 : vector<16x1xf32> to vector<1x16x1xf32>
      %cst_20 = arith.constant dense<0.000000e+00> : vector<1xf32>
      %49 = vector.multi_reduction <add>, %48, %cst_20 [1, 2] : vector<1x16x1xf32> to vector<1xf32>
      %50 = vector.shape_cast %49 : vector<1xf32> to vector<1x1x1xf32>
      %51 = vector.extract %50[0, 0, 0] : f32 from vector<1x1x1xf32>
      %c0_21 = arith.constant 0 : index
      %c0_22 = arith.constant 0 : index
      %52 = memref.load %arg4[%c0_21, %c0_22] : memref<1x1xf32, #tpu.memory_space<smem>>
      memref.store %51, %arg4[%c0_21, %c0_22] : memref<1x1xf32, #tpu.memory_space<smem>>
    } else {
    }
    return
  }
  func.func @transform_0(%arg0: i32, %arg1: i32) -> (i32, i32) {
    %c1_i32 = arith.constant 1 : i32
    %0 = arith.muli %arg0, %c1_i32 : i32
    %1 = arith.addi %0, %arg1 : i32
    %c0_i32 = arith.constant 0 : i32
    %c0_i32_0 = arith.constant 0 : i32
    return %1, %c0_i32 : i32, i32
  }
  func.func @transform_1(%arg0: i32, %arg1: i32) -> (i32, i32) {
    %c1_i32 = arith.constant 1 : i32
    %0 = arith.muli %arg0, %c1_i32 : i32
    %1 = arith.addi %0, %arg1 : i32
    %c0_i32 = arith.constant 0 : i32
    %c0_i32_0 = arith.constant 0 : i32
    return %1, %c0_i32 : i32, i32
  }
  func.func @transform_2(%arg0: i32, %arg1: i32) -> (i32, i32) {
    %c0_i32 = arith.constant 0 : i32
    %c0_i32_0 = arith.constant 0 : i32
    return %arg0, %c0_i32 : i32, i32
  }
}

</mosaic_0001>

<bundles_post_ra>
// kernel: tpu_custom_call.1
= control target key start
LH: loop header
LB: loop body
LE: loop exit
PB: predicated region body
PF: predicated region fallthrough
CT: control target
= control target key end

     0   :  { %vm85_vm0 = vcmask 261120   ;;  %s264_s0 = inlined_call_operand.vmem [shape: f32[8,32], index: 0, kind: input, shape index: {}]   ;;  %s265_s1 = inlined_call_operand.vmem [shape: s32[8,1], index: 1, kind: input, shape index: {}]   ;;  %s266_s2 = inlined_call_operand.hbm [shape: f32[1,1], index: 2, kind: output, shape index: {}]  }
   0x1   :  { %v83_v0 = vld [vmem:[%s264_s0] sm:$0xff] }
   0x2   :  { %7 = vsyncpa [#allocation4], 0  ;;  %v86_v1 = vsel %vm85_vm0, %v83_v0, -inf  ;;  %v227_v2 = vmov 0   ;;  %v114_v3 = vld [vmem:[%s265_s1] sm:$0xff]  ;;  %v116_v7 = vlaneseq  ;;  %v108_v12 = vsel %vm85_vm0, %v83_v0, 0.0 }
   0x3   :  { %212 = vset.pattern.permute.xlu0 %v227_v2  ;;  %vm80_vm2 = vcmask 7168   ;;  %v228_v15 = vmov 0.0   ;;  %s229_s1 = smov [#allocation3]  }
   0x4   :  { %87 = vmax.xlane.f32.xlu0 %v86_v1  ;;  %v117_v8 = vand.u32 127, %v116_v7  ;;  %81 = vst.msk [vmem:[#allocation2] sm:$0xff] %vm80_vm2, %v228_v15  ;;  %82 = vst.msk [vmem:[#allocation2 + $0x8] sm:$0xff] %vm80_vm2, %v228_v15 }
   0xb   :  { %v157_v16 = vld [vmem:[#allocation2 + $0x8] sm:$0xff]  ;;  %v156_v26 = vld [vmem:[#allocation2] sm:$0xff] }
   0xc   :  { %162 = vst.msk [vmem:[#allocation2 + $0x8] sm:$0xff] %vm80_vm2, %v157_v16 }
  0x13   :  { %v167_v29 = vld [vmem:[#allocation2 + $0x8] sm:$0xff] }
  0x14   :  { %v169_v30 = vsel %vm80_vm2, %v167_v29, 0.0 }
  0x1a   :  { %119 = vperm.xlu0 %212, %v114_v3  }
  0x8d   :  { %v88_v4 = vpop.xlane.xlu0 %87 }
  0x8e   :  { %v92_v5 = vsub.f32 %v83_v0, %v88_v4 }
  0x90   :  { %v94_v6 = vmul.f32 1.442695, %v92_v5 }
  0x92   :  { %213 = vpow2.f32 %v94_v6 }
  0x95   :  { %v120_v9 = vpop.permute.xlu0 %119 }
  0x96   :  { %vm124_vm1 = vcmp.eq.s32.totalorder %v117_v8, %v120_v9 }
  0x97   :  { %v126_v13 = vsel %vm124_vm1, %v83_v0, 0.0 }
  0x98   :  { %v128_v14 = vsel %vm85_vm0, %v126_v13, 0.0 }
  0x9f   :  { %v214_v10 = vpop.eup %213 }
  0xa0   :  { %v98_v11 = vsel %vm85_vm0, %v214_v10, 0.0 }
  0xa1   :  { %99 = vadd.xlane.f32.xlu1 %v98_v11 }
  0xa5   :  { %109 = vadd.xlane.f32.xlu1 %v108_v12 }
  0xa9   :  { %129 = vadd.xlane.f32.xlu1 %v128_v14 }
 0x12a   :  { %v100_v17 = vpop.xlane.xlu1 %99 }
 0x12b   :  { %215 = vlog2.f32 %v100_v17 }
 0x12e   :  { %v110_v18 = vpop.xlane.xlu1 %109 }
 0x12f   :  { %v136_v23 = vmul.f32 0.0032258064, %v110_v18 }
 0x132   :  { %v130_v20 = vpop.xlane.xlu1 %129 }
 0x133   :  { %v140_v24 = vmul.f32 0.8967742, %v130_v20 }
 0x138   :  { %v216_v19 = vpop.eup %215 }
 0x139   :  { %v105_v21 = vmul.f32 0.6931472, %v216_v19 }
 0x13b   :  { %v134_v22 = vadd.f32 %v105_v21, %v88_v4 }
 0x13d   :  { %v138_v25 = vsub.f32 %v134_v22, %v136_v23 }
 0x13f   :  { %v142_v27 = vsub.f32 %v138_v25, %v140_v24 }
 0x141   :  { %v158_v28 = vadd.f32 %v156_v26, %v142_v27 }
 0x143   :  { %161 = vst.msk [vmem:[#allocation2] sm:$0xff] %vm80_vm2, %v158_v28 }
 0x14a   :  { %v166_v31 = vld [vmem:[#allocation2] sm:$0xff] }
 0x14b   :  { %v168_v32 = vsel %vm80_vm2, %v166_v31, 0.0 }
 0x14c   :  { %v170_v33 = vadd.f32 %v169_v30, %v168_v32 }
 0x14e   :  { %171 = vadd.xlane.f32.xlu1 %v170_v33 }
 0x1d7   :  { %v172_v34 = vpop.xlane.xlu1 %171 }
 0x1d8   :  { %v173_v35 = vrot.slane %v172_v34, 4 }
 0x1da   :  { %v174_v36 = vadd.f32 %v173_v35, %v172_v34 }
 0x1dc   :  { %v175_v37 = vrot.slane %v174_v36, 2 }
 0x1de   :  { %v176_v38 = vadd.f32 %v175_v37, %v174_v36 }
 0x1e0   :  { %v177_v39 = vrot.slane %v176_v38, 1 }
 0x1e2   :  { %v178_v40 = vadd.f32 %v177_v39, %v176_v38 }
 0x1e4   :  { %207 = vpush %v178_v40 }
 0x215   :  { %s208_s0 = spop %207 }
 0x216   :  { %181 = sst [smem:[#allocation3]] %s208_s0 }
 0x217   :  { %189 = dma.smem_to_hbm %s229_s1, 16, %s266_s2, [#allocation4]  }
 0x218   :  { %225 = dma.done.wait [#allocation4], 16  }
 0x219   :  { %226 = vsyncadd [#allocation4], 4294967280 }
 0x21a   :  { %193 = sfence }
 0x21b   :  { %194 = vsyncpa [#allocation4], 1 }

</bundles_post_ra>
